<compile_context>
chip_gen: v7x
topology: tpu7x:2x2x1
jax: 0.10.0
libtpu: 0.0.40
codegen_flags: <defaults>
</compile_context>

<pallas_src>
import functools

import jax
import jax.numpy as jnp
import numpy as np
from jax import lax
from jax.experimental import pallas as pl
from jax.experimental.pallas import tpu as pltpu


def _round_up(x: int, m: int) -> int:
    return ((x + m - 1) // m) * m


def _make_conv_kernel(K: int, OHc: int, OWc: int):
    """Single-in/out-channel, stride-1 valid conv over a block of planes."""

    def kernel(x_ref, w_ref, b_ref, o_ref):
        # x_ref: (Bt, H, W)      f32 VMEM   (Bt input planes)
        # w_ref: (K*K,)          f32 SMEM   (flattened conv weight, row-major)
        # b_ref: (1,)            f32 SMEM
        # o_ref: (Bt, OHc, OWc)  f32 VMEM   (stride-1 valid conv; stride subsample in wrapper)

        # Hoist all weight scalar reads out of the tap loop (each used exactly once below).
        w = [w_ref[i] for i in range(K * K)]

        acc = None
        for ki in range(K):
            for kj in range(K):
                # Unit-stride load with the (ki, kj) offset folded into the load itself.
                # W <= 128 here, so the kj lane offset stays inside a single 128-lane tile;
                # for W > 128 switch the kj shift to pltpu.roll(..., axis=-1) to keep it on
                # the otherwise-idle XLU slot.
                tap = x_ref[:, pl.ds(ki, OHc), pl.ds(kj, OWc)]      # (Bt, OHc, OWc)
                term = w[ki * K + kj] * tap
                acc = term if acc is None else acc + term           # first tap inits acc
        # Bias added exactly once; single compact store.
        o_ref[...] = acc + b_ref[0]

    return kernel


def _choose_block_planes(B: int, per_plane_budget_bytes: int) -> int:
    """Largest divisor of B such that the packed block's VMEM budget stays ~<= 20 MiB
    (safe on v7x's 64 MiB / 32 MiB-scoped VMEM as well as v5e/v6e), capped at 1024 planes,
    and leaving >= 2 grid steps when B >= 2 so "parallel" can use both v7x TensorCores."""
    cap = max(1, (20 * 1024 * 1024) // max(per_plane_budget_bytes, 1))
    cap = min(cap, 1024)
    if B >= 2:
        cap = min(cap, B // 2)
    cap = max(cap, 1)
    return max(d for d in range(1, min(cap, B) + 1) if B % d == 0)


def _conv2d_1ch_batched(xb, weight, bias, *, stride: int):
    """Batched single-in/out-channel valid conv on (B, H, W) planes -> (B, OH, OW)."""
    B, H, W = xb.shape
    K = int(weight.shape[-1])
    OH = (H - K) // stride + 1
    OW = (W - K) // stride + 1
    OHc = H - K + 1          # stride-1 valid extents computed in-kernel
    OWc = W - K + 1

    # Per-plane VMEM footprint (f32, (8,128)-padded): double-buffered in/out tiles plus a
    # conservative allowance for the in-kernel value working set (acc + live taps).
    in_plane = _round_up(H, 8) * _round_up(W, 128) * 4
    out_plane = _round_up(OHc, 8) * _round_up(OWc, 128) * 4
    per_plane_budget = 2 * (in_plane + out_plane) + 4 * max(in_plane, out_plane)

    Bt = _choose_block_planes(B, per_plane_budget)
    # Derive the scoped-VMEM limit from the actual packed sizes (plus headroom) rather than a
    # fixed 32 MiB; floor at 16 MiB (v5e default), cap at 32 MiB (well under v7x's 64 MiB).
    vmem_limit = int(min(32 << 20, max(16 << 20, Bt * per_plane_budget + (2 << 20))))

    kernel = _make_conv_kernel(K, OHc, OWc)

    out = pl.pallas_call(
        kernel,
        out_shape=jax.ShapeDtypeStruct((B, OHc, OWc), jnp.float32),
        grid=(B // Bt,),
        in_specs=[
            pl.BlockSpec((Bt, H, W), lambda b: (b, 0, 0)),          # Bt planes per grid step
            pl.BlockSpec(memory_space=pltpu.MemorySpace.SMEM),      # flat weights
            pl.BlockSpec(memory_space=pltpu.MemorySpace.SMEM),      # bias scalar
        ],
        out_specs=pl.BlockSpec((Bt, OHc, OWc), lambda b: (b, 0, 0)),
        compiler_params=pltpu.CompilerParams(
            dimension_semantics=("parallel",),      # independent plane blocks (v7x: 2 TCs)
            vmem_limit_bytes=vmem_limit,
        ),
    )(
        xb.astype(jnp.float32),
        weight.reshape(-1).astype(jnp.float32),
        bias.astype(jnp.float32),
    )

    if stride == 1:
        return out
    # One fused XLA strided slice folds BOTH the row and column stride subsample of the
    # compact (B, OHc, OWc) result (no padded intermediate, no in-kernel strided/lane-gather
    # loads needed).
    return out[:, : (OH - 1) * stride + 1 : stride, : (OW - 1) * stride + 1 : stride]


@functools.partial(jax.jit, static_argnames=("stride",))
def test_convnet_forward(x, weight, bias, *, stride: int):
    """Replicates TestConvNet.forward.

    x:      (1, H, W) float32      (forward's input; x.shape[0] == 1 == in_channels)
    weight: (1, 1, K, K) float32   (nn.Conv2d weight)
    bias:   (1,) float32           (nn.Conv2d bias)
    returns (1, 1, OH, OW) float32 with OH = (H-K)//stride + 1, OW likewise.
    """
    out = _conv2d_1ch_batched(x, weight, bias, stride=stride)   # (1, OH, OW)
    return out[:, None, :, :]                                   # (1, 1, OH, OW)


@functools.partial(jax.jit, static_argnames=("stride",))
def conv2d_batched_forward(xb, weight, bias, *, stride: int):
    """Many planes packed per grid step through one pallas_call."""
    return _conv2d_1ch_batched(xb, weight, bias, stride=stride)


if __name__ == "__main__":
    KERNEL_SIZE = 3
    STRIDE = 2
    H = W = 16

    key = jax.random.PRNGKey(0)
    kx, kw, kb, kxb = jax.random.split(key, 4)

    # forward() input: (x.shape[0]=1, H, W) — reshaped inside forward to (1,1,H,W)
    x = jax.random.normal(kx, (1, H, W), dtype=jnp.float32)

    # Deterministic Conv2d parameter init (PyTorch-style uniform bound 1/sqrt(fan_in))
    fan_in = 1 * KERNEL_SIZE * KERNEL_SIZE
    bound = 1.0 / np.sqrt(fan_in)
    weight = jax.random.uniform(kw, (1, 1, KERNEL_SIZE, KERNEL_SIZE),
                                minval=-bound, maxval=bound, dtype=jnp.float32)
    bias = jax.random.uniform(kb, (1,), minval=-bound, maxval=bound,
                              dtype=jnp.float32)

    OH = (H - KERNEL_SIZE) // STRIDE + 1
    OW = (W - KERNEL_SIZE) // STRIDE + 1

    # --- module path (B = 1 plane, exact TestConvNet semantics) ---
    out = jax.block_until_ready(test_convnet_forward(x, weight, bias, stride=STRIDE))
    ref = lax.conv_general_dilated(
        x.reshape(1, 1, H, W), weight,
        window_strides=(STRIDE, STRIDE), padding="VALID",
        dimension_numbers=("NCHW", "OIHW", "NCHW"),
        precision=lax.Precision.HIGHEST,
    ) + bias.reshape(1, 1, 1, 1)
    np.testing.assert_allclose(np.asarray(out), np.asarray(ref), rtol=1e-5, atol=1e-5)
    assert out.shape == (1, 1, OH, OW)

    # --- batched path: many planes per grid step (Bt=128 -> grid=(2,) here) ---
    B = 256
    xb = jax.random.normal(kxb, (B, H, W), dtype=jnp.float32)
    outb = jax.block_until_ready(conv2d_batched_forward(xb, weight, bias, stride=STRIDE))
    refb = lax.conv_general_dilated(
        xb[:, None, :, :], weight,
        window_strides=(STRIDE, STRIDE), padding="VALID",
        dimension_numbers=("NCHW", "OIHW", "NCHW"),
        precision=lax.Precision.HIGHEST,
    )[:, 0] + bias[0]
    np.testing.assert_allclose(np.asarray(outb), np.asarray(refb), rtol=1e-5, atol=1e-5)
    assert outb.shape == (B, OH, OW)

    print("KERNEL_OK")
</pallas_src>

<mosaic_0001>
module attributes {stable_mosaic.version = 11 : i64} {
  func.func @kernel(%arg0: i32, %arg1: memref<1x16x16xf32, #tpu.memory_space<vmem>>, %arg2: memref<9xf32, #tpu.memory_space<smem>>, %arg3: memref<1xf32, #tpu.memory_space<smem>>, %arg4: memref<1x14x14xf32, #tpu.memory_space<vmem>>) attributes {dimension_semantics = [#tpu.dimension_semantics<parallel>], iteration_bounds = array<i64: 1>, scalar_prefetch = 0 : i64, scratch_operands = 0 : i64, tpu.core_type = #tpu.core_type<tc>, window_params = [{transform_indices = @transform_0, window_bounds = array<i64: 1, 16, 16>}, {transform_indices = @transform_1, window_bounds = array<i64: 9>}, {transform_indices = @transform_2, window_bounds = array<i64: 1>}, {transform_indices = @transform_3, window_bounds = array<i64: 1, 14, 14>}]} {
    %c0 = arith.constant 0 : index
    %0 = memref.load %arg2[%c0] : memref<9xf32, #tpu.memory_space<smem>>
    %c1 = arith.constant 1 : index
    %1 = memref.load %arg2[%c1] : memref<9xf32, #tpu.memory_space<smem>>
    %c2 = arith.constant 2 : index
    %2 = memref.load %arg2[%c2] : memref<9xf32, #tpu.memory_space<smem>>
    %c3 = arith.constant 3 : index
    %3 = memref.load %arg2[%c3] : memref<9xf32, #tpu.memory_space<smem>>
    %c4 = arith.constant 4 : index
    %4 = memref.load %arg2[%c4] : memref<9xf32, #tpu.memory_space<smem>>
    %c5 = arith.constant 5 : index
    %5 = memref.load %arg2[%c5] : memref<9xf32, #tpu.memory_space<smem>>
    %c6 = arith.constant 6 : index
    %6 = memref.load %arg2[%c6] : memref<9xf32, #tpu.memory_space<smem>>
    %c7 = arith.constant 7 : index
    %7 = memref.load %arg2[%c7] : memref<9xf32, #tpu.memory_space<smem>>
    %c8 = arith.constant 8 : index
    %8 = memref.load %arg2[%c8] : memref<9xf32, #tpu.memory_space<smem>>
    %c0_0 = arith.constant 0 : index
    %c0_1 = arith.constant 0 : index
    %c0_2 = arith.constant 0 : index
    %9 = vector.load %arg1[%c0_0, %c0_1, %c0_2] : memref<1x16x16xf32, #tpu.memory_space<vmem>>, vector<1x14x14xf32>
    %10 = vector.broadcast %0 : f32 to vector<1x14x14xf32>
    %11 = arith.mulf %10, %9 : vector<1x14x14xf32>
    %c0_3 = arith.constant 0 : index
    %c0_4 = arith.constant 0 : index
    %c1_5 = arith.constant 1 : index
    %12 = vector.load %arg1[%c0_3, %c0_4, %c1_5] : memref<1x16x16xf32, #tpu.memory_space<vmem>>, vector<1x14x14xf32>
    %13 = vector.broadcast %1 : f32 to vector<1x14x14xf32>
    %14 = arith.mulf %13, %12 : vector<1x14x14xf32>
    %15 = arith.addf %11, %14 : vector<1x14x14xf32>
    %c0_6 = arith.constant 0 : index
    %c0_7 = arith.constant 0 : index
    %c2_8 = arith.constant 2 : index
    %16 = vector.load %arg1[%c0_6, %c0_7, %c2_8] : memref<1x16x16xf32, #tpu.memory_space<vmem>>, vector<1x14x14xf32>
    %17 = vector.broadcast %2 : f32 to vector<1x14x14xf32>
    %18 = arith.mulf %17, %16 : vector<1x14x14xf32>
    %19 = arith.addf %15, %18 : vector<1x14x14xf32>
    %c0_9 = arith.constant 0 : index
    %c1_10 = arith.constant 1 : index
    %c0_11 = arith.constant 0 : index
    %20 = vector.load %arg1[%c0_9, %c1_10, %c0_11] : memref<1x16x16xf32, #tpu.memory_space<vmem>>, vector<1x14x14xf32>
    %21 = vector.broadcast %3 : f32 to vector<1x14x14xf32>
    %22 = arith.mulf %21, %20 : vector<1x14x14xf32>
    %23 = arith.addf %19, %22 : vector<1x14x14xf32>
    %c0_12 = arith.constant 0 : index
    %c1_13 = arith.constant 1 : index
    %c1_14 = arith.constant 1 : index
    %24 = vector.load %arg1[%c0_12, %c1_13, %c1_14] : memref<1x16x16xf32, #tpu.memory_space<vmem>>, vector<1x14x14xf32>
    %25 = vector.broadcast %4 : f32 to vector<1x14x14xf32>
    %26 = arith.mulf %25, %24 : vector<1x14x14xf32>
    %27 = arith.addf %23, %26 : vector<1x14x14xf32>
    %c0_15 = arith.constant 0 : index
    %c1_16 = arith.constant 1 : index
    %c2_17 = arith.constant 2 : index
    %28 = vector.load %arg1[%c0_15, %c1_16, %c2_17] : memref<1x16x16xf32, #tpu.memory_space<vmem>>, vector<1x14x14xf32>
    %29 = vector.broadcast %5 : f32 to vector<1x14x14xf32>
    %30 = arith.mulf %29, %28 : vector<1x14x14xf32>
    %31 = arith.addf %27, %30 : vector<1x14x14xf32>
    %c0_18 = arith.constant 0 : index
    %c2_19 = arith.constant 2 : index
    %c0_20 = arith.constant 0 : index
    %32 = vector.load %arg1[%c0_18, %c2_19, %c0_20] : memref<1x16x16xf32, #tpu.memory_space<vmem>>, vector<1x14x14xf32>
    %33 = vector.broadcast %6 : f32 to vector<1x14x14xf32>
    %34 = arith.mulf %33, %32 : vector<1x14x14xf32>
    %35 = arith.addf %31, %34 : vector<1x14x14xf32>
    %c0_21 = arith.constant 0 : index
    %c2_22 = arith.constant 2 : index
    %c1_23 = arith.constant 1 : index
    %36 = vector.load %arg1[%c0_21, %c2_22, %c1_23] : memref<1x16x16xf32, #tpu.memory_space<vmem>>, vector<1x14x14xf32>
    %37 = vector.broadcast %7 : f32 to vector<1x14x14xf32>
    %38 = arith.mulf %37, %36 : vector<1x14x14xf32>
    %39 = arith.addf %35, %38 : vector<1x14x14xf32>
    %c0_24 = arith.constant 0 : index
    %c2_25 = arith.constant 2 : index
    %c2_26 = arith.constant 2 : index
    %40 = vector.load %arg1[%c0_24, %c2_25, %c2_26] : memref<1x16x16xf32, #tpu.memory_space<vmem>>, vector<1x14x14xf32>
    %41 = vector.broadcast %8 : f32 to vector<1x14x14xf32>
    %42 = arith.mulf %41, %40 : vector<1x14x14xf32>
    %43 = arith.addf %39, %42 : vector<1x14x14xf32>
    %c0_27 = arith.constant 0 : index
    %44 = memref.load %arg3[%c0_27] : memref<1xf32, #tpu.memory_space<smem>>
    %45 = vector.broadcast %44 : f32 to vector<1x14x14xf32>
    %46 = arith.addf %43, %45 : vector<1x14x14xf32>
    %c0_28 = arith.constant 0 : index
    %c0_29 = arith.constant 0 : index
    %c0_30 = arith.constant 0 : index
    %47 = vector.load %arg4[%c0_28, %c0_29, %c0_30] : memref<1x14x14xf32, #tpu.memory_space<vmem>>, vector<1x14x14xf32>
    tpu.vector_store %arg4[%c0_28, %c0_29, %c0_30], %46 {strides = array<i32>} : memref<1x14x14xf32, #tpu.memory_space<vmem>>, vector<1x14x14xf32>,
    return
  }
  func.func @transform_0(%arg0: i32) -> (i32, i32, i32) {
    %c0_i32 = arith.constant 0 : i32
    %c0_i32_0 = arith.constant 0 : i32
    %c0_i32_1 = arith.constant 0 : i32
    return %arg0, %c0_i32, %c0_i32_0 : i32, i32, i32
  }
  func.func @transform_1(%arg0: i32) -> i32 {
    %c0_i32 = arith.constant 0 : i32
    %c0_i32_0 = arith.constant 0 : i32
    return %c0_i32 : i32
  }
  func.func @transform_2(%arg0: i32) -> i32 {
    %c0_i32 = arith.constant 0 : i32
    %c0_i32_0 = arith.constant 0 : i32
    return %c0_i32 : i32
  }
  func.func @transform_3(%arg0: i32) -> (i32, i32, i32) {
    %c0_i32 = arith.constant 0 : i32
    %c0_i32_0 = arith.constant 0 : i32
    %c0_i32_1 = arith.constant 0 : i32
    return %arg0, %c0_i32, %c0_i32_0 : i32, i32, i32
  }
}

</mosaic_0001>

<bundles_post_ra>
// kernel: test_convnet_forward.1
= control target key start
LH: loop header
LB: loop body
LE: loop exit
PB: predicated region body
PF: predicated region fallthrough
CT: control target
= control target key end

     0   :  { %9 = vsyncpa [#allocation4], 0  ;;  %s231_s0 = inlined_call_operand.vmem [shape: f32[1,16,16], index: 0, kind: input, shape index: {}]   ;;  %s232_s1 = inlined_call_operand.vmem [shape: f32[9], index: 1, kind: input, shape index: {}]   ;;  %s233_s2 = inlined_call_operand.<no memory space> [shape: f32[1], index: 2, kind: input, shape index: {}]   ;;  %s234_s3 = inlined_call_operand.vmem [shape: f32[1,14,14], index: 3, kind: output, shape index: {}]  }
   0x1   :  { %s18_s14 = sshll.u32 %s232_s1, 4  ;;  %s19_s14 = int_to_ptr.vmem [resolvable:$true] %s18_s14 }
   0x2   :  { %s158_s15 = scalar_lea.vmem %s19_s14, 16  ;;  %p163_p1 = scmp.lt.s32.totalorder %s19_s14, %s19_s14 }
   0x3   :  { %p159_p0 = scmp.ne.s32.totalorder %s19_s14, %s158_s15  ;;  %p164_p2 = scmp.lt.s32.totalorder %s158_s15, %s158_s15 }
   0x5   :  { %p165_p3 = por %p164_p2, %p163_p1 }
   0x7   :  { %p166_p4 = pnand %p165_p3, %p159_p0 }
   0x9   :  { %169 = shalt.err (!%p166_p4)
}
   0xa   :  { %s172_s16 = smov [#allocation3]  }
   0xb   :  { %21 = dma.vmem_to_smem %s19_s14, 16, %s172_s16, [#allocation4]  }
   0xc   :  { %170 = dma.done.wait [#allocation4], 16  }
   0xd   :  { %171 = vsyncadd [#allocation4], 4294967280 }
   0xe   :  { %27 = sfence }
   0xf   :  { %s148_s17 = sld [smem:[#allocation3 + $0x2]]  ;;  %s147_s18 = sld [smem:[#allocation3 + $0x1]]  ;;  %v37_v0 = vld [vmem:[%s231_s0] sm:$0xff]  ;;  %v38_v1 = vld [vmem:[%s231_s0 + $0x8] sm:$0x3f]  ;;  %v135_v57 = vstv %s233_s2  ;;  %vm140_vm0 = vcmask 111616  }
  0x10   :  { %s150_s19 = sld [smem:[#allocation3 + $0x4]]  ;;  %s151_s23 = sld [smem:[#allocation3 + $0x5]]  ;;  %v69_v8 = vld [vmem:[%s231_s0 + $0x9] sm:$0x3f]  ;;  %v68_v10 = vld [vmem:[%s231_s0 + $0x1] sm:$0xff]  ;;  %vm138_vm1 = vcmask 113664  }
  0x11   :  { %s173_s24 = smov 126   ;;  %s174_s25 = smov 127   ;;  %v102_v16 = vld [vmem:[%s231_s0 + $0xa] sm:$0x3f]  ;;  %v101_v18 = vld [vmem:[%s231_s0 + $0x2] sm:$0xff] }
  0x12   :  { %s153_s28 = sld [smem:[#allocation3 + $0x7]]  ;;  %s154_s4 = sld [smem:[#allocation3 + $0x8]] }
  0x13   :  { %s28_s9 = sld [smem:[#allocation3]]  ;;  %s149_s10 = sld [smem:[#allocation3 + $0x3]] }
  0x14   :  { %s152_s0 = sld [smem:[#allocation3 + $0x6]] }
  0x15   :  { %v55_v2 = vstv %s148_s17  ;;  %v42_v4 = vstv %s147_s18 }
  0x16   :  { %v56_v3 = vmul.f32 %v55_v2, %v37_v0  ;;  %v43_v5 = vmul.f32 %v42_v4, %v37_v0  ;;  %v57_v6 = vmul.f32 %v55_v2, %v38_v1  ;;  %v44_v7 = vmul.f32 %v42_v4, %v38_v1 }
  0x17   :  { %v75_v9 = vstv %s150_s19  ;;  %v88_v13 = vstv %s151_s23 }
  0x18   :  { %60 = vrot.lane.b32.xlu1 %v56_v3, %s173_s24  ;;  %47 = vrot.lane.b32.xlu0 %v43_v5, %s174_s25  ;;  %v77_v11 = vmul.f32 %v75_v9, %v69_v8  ;;  %v76_v12 = vmul.f32 %v75_v9, %v68_v10  ;;  %v90_v14 = vmul.f32 %v88_v13, %v69_v8  ;;  %v108_v17 = vstv %s153_s28 }
  0x19   :  { %v89_v15 = vmul.f32 %v88_v13, %v68_v10  ;;  %v110_v19 = vmul.f32 %v108_v17, %v102_v16  ;;  %v109_v20 = vmul.f32 %v108_v17, %v101_v18  ;;  %v121_v21 = vstv %s154_s4 }
  0x1a   :  { %v123_v22 = vmul.f32 %v121_v21, %v102_v16  ;;  %v122_v23 = vmul.f32 %v121_v21, %v101_v18  ;;  %v39_v24 = vstv %s28_s9  ;;  %v70_v26 = vstv %s149_s10 }
  0x1b   :  { %v40_v25 = vmul.f32 %v39_v24, %v37_v0  ;;  %v41_v30 = vmul.f32 %v39_v24, %v38_v1  ;;  %v71_v31 = vmul.f32 %v70_v26, %v68_v10  ;;  %v72_v36 = vmul.f32 %v70_v26, %v69_v8 }
  0x1c   :  { %62 = vrot.lane.b32.xlu1 %v57_v6, %s173_s24  ;;  %49 = vrot.lane.b32.xlu0 %v44_v7, %s174_s25  ;;  %v103_v41 = vstv %s152_s0 }
  0x1d   :  { %v105_v46 = vmul.f32 %v103_v41, %v102_v16  ;;  %v104_v47 = vmul.f32 %v103_v41, %v101_v18 }
  0x20   :  { %82 = vrot.lane.b32.xlu1 %v77_v11, %s174_s25  ;;  %80 = vrot.lane.b32.xlu0 %v76_v12, %s174_s25 }
  0x24   :  { %95 = vrot.lane.b32.xlu1 %v90_v14, %s173_s24  ;;  %93 = vrot.lane.b32.xlu0 %v89_v15, %s173_s24 }
  0x28   :  { %115 = vrot.lane.b32.xlu1 %v110_v19, %s174_s25  ;;  %113 = vrot.lane.b32.xlu0 %v109_v20, %s174_s25 }
  0x2c   :  { %128 = vrot.lane.b32.xlu1 %v123_v22, %s173_s24  ;;  %126 = vrot.lane.b32.xlu0 %v122_v23, %s173_s24 }
  0x8a   :  { %v61_v27 = vpop.permute.xlu1 %60  ;;  %v48_v28 = vpop.permute.xlu0 %47 }
  0x8b   :  { %v53_v29 = vadd.f32 %v48_v28, %v40_v25 }
  0x8d   :  { %v66_v32 = vadd.f32 %v61_v27, %v53_v29 }
  0x8e   :  { %v63_v33 = vpop.permute.xlu1 %62  ;;  %v50_v34 = vpop.permute.xlu0 %49 }
  0x8f   :  { %v54_v35 = vadd.f32 %v50_v34, %v41_v30  ;;  %v73_v37 = vadd.f32 %v71_v31, %v66_v32 }
  0x91   :  { %v67_v38 = vadd.f32 %v63_v33, %v54_v35 }
  0x92   :  { %v83_v39 = vpop.permute.xlu1 %82  ;;  %v81_v40 = vpop.permute.xlu0 %80 }
  0x93   :  { %v74_v42 = vadd.f32 %v72_v36, %v67_v38  ;;  %v86_v44 = vadd.f32 %v81_v40, %v73_v37 }
  0x95   :  { %v87_v43 = vadd.f32 %v83_v39, %v74_v42 }
  0x96   :  { %v96_v45 = vpop.permute.xlu1 %95  ;;  %v94_v48 = vpop.permute.xlu0 %93 }
  0x97   :  { %v100_v49 = vadd.f32 %v96_v45, %v87_v43  ;;  %v99_v50 = vadd.f32 %v94_v48, %v86_v44 }
  0x99   :  { %v107_v52 = vadd.f32 %v105_v46, %v100_v49  ;;  %v106_v53 = vadd.f32 %v104_v47, %v99_v50 }
  0x9a   :  { %v116_v51 = vpop.permute.xlu1 %115  ;;  %v114_v54 = vpop.permute.xlu0 %113 }
  0x9b   :  { %v120_v55 = vadd.f32 %v116_v51, %v107_v52  ;;  %v119_v56 = vadd.f32 %v114_v54, %v106_v53 }
  0x9e   :  { %v129_v58 = vpop.permute.xlu1 %128  ;;  %v127_v60 = vpop.permute.xlu0 %126 }
  0x9f   :  { %v133_v59 = vadd.f32 %v129_v58, %v120_v55  ;;  %v132_v61 = vadd.f32 %v127_v60, %v119_v56 }
  0xa1   :  { %v137_v62 = vadd.f32 %v135_v57, %v133_v59  ;;  %v136_v63 = vadd.f32 %v135_v57, %v132_v61 }
  0xa3   :  { %141 = vst.msk [vmem:[%s234_s3 + $0x8] sm:$0x3f] %vm140_vm0, %v137_v62 }
  0xa4   :  { %139 = vst.msk [vmem:[%s234_s3] sm:$0xff] %vm138_vm1, %v136_v63 }
  0xa5   :  { %146 = vsyncpa [#allocation4], 1 }

</bundles_post_ra>
